<compile_context>
chip_gen: v7x
topology: tpu7x:2x2x1
jax: 0.10.0
libtpu: 0.0.40
codegen_flags: <defaults>
</compile_context>

<pallas_src>
import jax
import jax.numpy as jnp
from jax import lax
from jax.experimental import pallas as pl
from jax.experimental.pallas import tpu as pltpu


def _round_up(n, m):
    return ((n + m - 1) // m) * m


def mlp_kernel(x_ref, w1_ref, b1_ref, w2_ref, b2_ref, w3_ref, b3_ref, o_ref):
    # x_ref: (TB, D_in) f32 batch tile (pipelined over the grid).
    # w1/w2/w3 are bf16, biases f32; all weights/biases are VMEM-resident blocks.

    # Layer 1: Linear(D_in, 128) + ReLU.  Cast x on the VPU (free, hidden under
    # DMA), bf16 MXU matmul with f32 accumulation, bias + ReLU in f32.
    x_bf = x_ref[...].astype(jnp.bfloat16)
    h1 = jnp.dot(x_bf, w1_ref[...], preferred_element_type=jnp.float32)
    h1 = jnp.maximum(h1 + b1_ref[...], 0.0)                        # (TB, 128) f32

    # Dropout(0.3): identity at inference time (PyTorch eval semantics).

    # Layer 2: Linear(128, 64) + ReLU.  bf16 MXU matmul, f32 accumulate/elementwise.
    h2 = jnp.dot(h1.astype(jnp.bfloat16), w2_ref[...],
                 preferred_element_type=jnp.float32)
    h2 = jnp.maximum(h2 + b2_ref[...], 0.0)                        # (TB, 64) f32

    # Layer 3: Linear(64, 1) + Sigmoid, computed transposed so the stored block
    # is lane-dense:  z[0, j] = sum_k w3[0, k] * h2[j, k]  -> (1, TB).
    z = lax.dot_general(
        w3_ref[...], h2.astype(jnp.bfloat16),
        dimension_numbers=(((1,), (1,)), ((), ())),
        preferred_element_type=jnp.float32,
    )                                                              # (1, TB)
    z = z + b3_ref[...]                                            # (1,1) broadcast

    # exp and the approximate reciprocal both issue on the EUP slot.
    sig = pl.reciprocal(1.0 + jnp.exp(-z), approx=True)            # (1, TB)
    o_ref[0] = sig.astype(o_ref.dtype)                             # block (1, 1, TB)


def _pick_batch_tile(B, d_in, tb_max, vmem_budget_bytes):
    """Pick the batch tile from a per-row VMEM budget (x dbl-buffer + h1/h2)."""
    d_in_lane = _round_up(d_in, 128)                 # lane padding of the x tile
    per_row = (2 * 4 * d_in_lane                     # x f32, double-buffered
               + 1536                                # h1/h2 f32 + bf16 copies
               + 8)                                  # output f32, double-buffered
    tb_cap = max(128, (vmem_budget_bytes // per_row) // 128 * 128)
    b_pad128 = _round_up(B, 128)
    tb = min(tb_max, tb_cap, b_pad128)
    # Large single-tile batches: split in two so the "parallel" batch axis can
    # shard across both TensorCores on dual-TC parts (v7x).
    if b_pad128 >= 2048 and tb >= b_pad128:
        tb = _round_up((b_pad128 + 1) // 2, 128)
    return max(tb, 128)


def mlp_forward(x, params, *, tb_max=8192):
    """Fused MLP forward.  x: (B, D_in) float.  Returns (B, 1) float32."""
    w1, b1, w2, b2, w3, b3 = params
    B, d_in = x.shape
    d_in_w, h1_dim = w1.shape
    h2_dim = w2.shape[1]
    assert d_in == d_in_w

    # Conservative VMEM budget for the streamed-x double buffer + intermediates:
    # fits v6e/v7x 32 MiB default scope; vmem_limit_bytes below covers v5e's
    # 16 MiB default while staying well under v7x's 64 MiB physical VMEM.
    vmem_budget = 20 * 1024 * 1024
    tb = _pick_batch_tile(B, d_in, tb_max, vmem_budget)
    b_pad = _round_up(B, tb)
    n_tiles = b_pad // tb

    x_f32 = x.astype(jnp.float32)
    if b_pad != B:
        x_f32 = jnp.pad(x_f32, ((0, b_pad - B), (0, 0)))

    # Resident weights: one-time bf16 cast (feeds bf16 MXU matmuls). Biases stay f32.
    w1_bf = w1.astype(jnp.bfloat16)
    w2_bf = w2.astype(jnp.bfloat16)
    w3_row = w3.reshape(1, h2_dim).astype(jnp.bfloat16)    # (64, 1) -> (1, 64)

    flops = 2 * b_pad * (d_in * h1_dim + h1_dim * h2_dim + h2_dim)
    bytes_accessed = (b_pad * d_in * 4 + b_pad * 4                 # x stream + out
                      + d_in * h1_dim * 2 + h1_dim * h2_dim * 2 + h2_dim * 2
                      + h1_dim * 4 + h2_dim * 4 + 4)               # weights + biases
    cost = pl.CostEstimate(flops=flops, transcendentals=2 * b_pad,
                           bytes_accessed=bytes_accessed)

    out = pl.pallas_call(
        mlp_kernel,
        out_shape=jax.ShapeDtypeStruct((n_tiles, 1, tb), jnp.float32),
        grid=(n_tiles,),
        in_specs=[
            pl.BlockSpec((tb, d_in), lambda i: (i, 0)),        # x: tiled over batch
            pl.BlockSpec((d_in, h1_dim), lambda i: (0, 0)),    # w1 bf16 (resident)
            pl.BlockSpec((1, h1_dim), lambda i: (0, 0)),       # b1
            pl.BlockSpec((h1_dim, h2_dim), lambda i: (0, 0)),  # w2 bf16
            pl.BlockSpec((1, h2_dim), lambda i: (0, 0)),       # b2
            pl.BlockSpec((1, h2_dim), lambda i: (0, 0)),       # w3 row bf16
            pl.BlockSpec((1, 1), lambda i: (0, 0)),            # b3
        ],
        out_specs=pl.BlockSpec((1, 1, tb), lambda i: (i, 0, 0)),
        compiler_params=pltpu.CompilerParams(
            dimension_semantics=("parallel",),
            vmem_limit_bytes=32 * 1024 * 1024),
        cost_estimate=cost,
    )(x_f32, w1_bf, b1, w2_bf, b2, w3_row, b3)

    # (n_tiles, 1, TB) lane-dense slab -> (B, 1) column, dropping batch padding.
    return out.reshape(-1)[:B].reshape(B, 1)


def init_params(key, input_size):
    """Deterministic init mimicking torch.nn.Linear default (uniform +-1/sqrt(fan_in)).
    Weights stored as [in_features, out_features] (transposed vs PyTorch [out, in])."""
    dims = [(input_size, 128), (128, 64), (64, 1)]
    params = []
    for i, (fan_in, fan_out) in enumerate(dims):
        kw, kb, key = jax.random.split(jax.random.fold_in(key, i), 3)
        bound = 1.0 / jnp.sqrt(float(fan_in))
        w = jax.random.uniform(kw, (fan_in, fan_out), jnp.float32, -bound, bound)
        b = jax.random.uniform(kb, (1, fan_out), jnp.float32, -bound, bound)
        params += [w, b]
    return tuple(params)


def mlp_reference(x, params):
    w1, b1, w2, b2, w3, b3 = params
    h1 = jnp.maximum(x @ w1 + b1, 0.0)
    h2 = jnp.maximum(h1 @ w2 + b2, 0.0)
    return jax.nn.sigmoid(h2 @ w3 + b3)


if __name__ == "__main__":
    key = jax.random.PRNGKey(0)
    batch, input_size = 8, 32

    kx, kp = jax.random.split(key)
    x = jax.random.normal(kx, (batch, input_size), jnp.float32)
    params = init_params(kp, input_size)

    out = mlp_forward(x, params)
    out = jax.block_until_ready(out)

    ref = mlp_reference(x, params)
    assert out.shape == (batch, 1)
    # bf16 matmul operands (x/h1/h2/weights) vs all-f32 reference -> loose tolerance.
    assert jnp.allclose(out, ref, atol=2e-2, rtol=2e-2), (
        "max abs diff = %f" % float(jnp.max(jnp.abs(out - ref))))

    print("KERNEL_OK")
</pallas_src>

<mosaic_0001>
module attributes {stable_mosaic.version = 11 : i64} {
  func.func @mlp_kernel(%arg0: i32, %arg1: memref<128x32xf32, #tpu.memory_space<vmem>>, %arg2: memref<32x128xbf16, #tpu.memory_space<vmem>>, %arg3: memref<1x128xf32, #tpu.memory_space<vmem>>, %arg4: memref<128x64xbf16, #tpu.memory_space<vmem>>, %arg5: memref<1x64xf32, #tpu.memory_space<vmem>>, %arg6: memref<1x64xbf16, #tpu.memory_space<vmem>>, %arg7: memref<1x1xf32, #tpu.memory_space<vmem>>, %arg8: memref<1x1x128xf32, #tpu.memory_space<vmem>>) attributes {dimension_semantics = [#tpu.dimension_semantics<parallel>], iteration_bounds = array<i64: 1>, scalar_prefetch = 0 : i64, scratch_operands = 0 : i64, tpu.core_type = #tpu.core_type<tc>, window_params = [{transform_indices = @transform_0, window_bounds = array<i64: 128, 32>}, {pipeline_mode = #tpu.pipeline_mode<synchronous>, transform_indices = @transform_1, window_bounds = array<i64: 32, 128>}, {pipeline_mode = #tpu.pipeline_mode<synchronous>, transform_indices = @transform_2, window_bounds = array<i64: 1, 128>}, {pipeline_mode = #tpu.pipeline_mode<synchronous>, transform_indices = @transform_3, window_bounds = array<i64: 128, 64>}, {pipeline_mode = #tpu.pipeline_mode<synchronous>, transform_indices = @transform_4, window_bounds = array<i64: 1, 64>}, {pipeline_mode = #tpu.pipeline_mode<synchronous>, transform_indices = @transform_5, window_bounds = array<i64: 1, 64>}, {pipeline_mode = #tpu.pipeline_mode<synchronous>, transform_indices = @transform_6, window_bounds = array<i64: 1, 1>}, {transform_indices = @transform_7, window_bounds = array<i64: 1, 1, 128>}]} {
    %c0 = arith.constant 0 : index
    %c0_0 = arith.constant 0 : index
    %0 = vector.load %arg1[%c0, %c0_0] : memref<128x32xf32, #tpu.memory_space<vmem>>, vector<128x32xf32>
    %1 = arith.truncf %0 : vector<128x32xf32> to vector<128x32xbf16>
    %c0_1 = arith.constant 0 : index
    %c0_2 = arith.constant 0 : index
    %2 = vector.load %arg2[%c0_1, %c0_2] : memref<32x128xbf16, #tpu.memory_space<vmem>>, vector<32x128xbf16>
    %cst = arith.constant dense<0.000000e+00> : vector<128x128xf32>
    %3 = tpu.matmul %1, %2, %cst {dimension_numbers = #tpu.dot_dimension_numbers<[1], [0], [0], [1], [0, 0, 1, 1], [], []>} : vector<128x32xbf16>, vector<32x128xbf16>, vector<128x128xf32> -> vector<128x128xf32>
    %c0_3 = arith.constant 0 : index
    %c0_4 = arith.constant 0 : index
    %4 = vector.load %arg3[%c0_3, %c0_4] : memref<1x128xf32, #tpu.memory_space<vmem>>, vector<1x128xf32>
    %5 = vector.broadcast %4 : vector<1x128xf32> to vector<128x128xf32>
    %6 = arith.addf %3, %5 : vector<128x128xf32>
    %cst_5 = arith.constant 0.000000e+00 : f32
    %7 = vector.broadcast %cst_5 : f32 to vector<128x128xf32>
    %8 = arith.maximumf %6, %7 : vector<128x128xf32>
    %9 = arith.truncf %8 : vector<128x128xf32> to vector<128x128xbf16>
    %c0_6 = arith.constant 0 : index
    %c0_7 = arith.constant 0 : index
    %10 = vector.load %arg4[%c0_6, %c0_7] : memref<128x64xbf16, #tpu.memory_space<vmem>>, vector<128x64xbf16>
    %cst_8 = arith.constant dense<0.000000e+00> : vector<128x64xf32>
    %11 = tpu.matmul %9, %10, %cst_8 {dimension_numbers = #tpu.dot_dimension_numbers<[1], [0], [0], [1], [0, 0, 1, 1], [], []>} : vector<128x128xbf16>, vector<128x64xbf16>, vector<128x64xf32> -> vector<128x64xf32>
    %c0_9 = arith.constant 0 : index
    %c0_10 = arith.constant 0 : index
    %12 = vector.load %arg5[%c0_9, %c0_10] : memref<1x64xf32, #tpu.memory_space<vmem>>, vector<1x64xf32>
    %13 = vector.broadcast %12 : vector<1x64xf32> to vector<128x64xf32>
    %14 = arith.addf %11, %13 : vector<128x64xf32>
    %cst_11 = arith.constant 0.000000e+00 : f32
    %15 = vector.broadcast %cst_11 : f32 to vector<128x64xf32>
    %16 = arith.maximumf %14, %15 : vector<128x64xf32>
    %c0_12 = arith.constant 0 : index
    %c0_13 = arith.constant 0 : index
    %17 = vector.load %arg6[%c0_12, %c0_13] : memref<1x64xbf16, #tpu.memory_space<vmem>>, vector<1x64xbf16>
    %18 = arith.truncf %16 : vector<128x64xf32> to vector<128x64xbf16>
    %cst_14 = arith.constant dense<0.000000e+00> : vector<1x128xf32>
    %19 = tpu.matmul %17, %18, %cst_14 {dimension_numbers = #tpu.dot_dimension_numbers<[1], [1], [0], [0], [0, 0, 1, 0], [], []>} : vector<1x64xbf16>, vector<128x64xbf16>, vector<1x128xf32> -> vector<1x128xf32>
    %c0_15 = arith.constant 0 : index
    %c0_16 = arith.constant 0 : index
    %20 = vector.load %arg7[%c0_15, %c0_16] : memref<1x1xf32, #tpu.memory_space<vmem>>, vector<1x1xf32>
    %21 = vector.broadcast %20 : vector<1x1xf32> to vector<1x128xf32>
    %22 = arith.addf %19, %21 : vector<1x128xf32>
    %cst_17 = arith.constant 0.000000e+00 : f32
    %23 = vector.broadcast %cst_17 : f32 to vector<1x128xf32>
    %24 = arith.subf %23, %22 : vector<1x128xf32>
    %25 = math.exp %24 : vector<1x128xf32>
    %cst_18 = arith.constant 1.000000e+00 : f32
    %26 = vector.broadcast %cst_18 : f32 to vector<1x128xf32>
    %27 = arith.addf %26, %25 : vector<1x128xf32>
    %28 = tpu.reciprocal %27 {approx = true} : vector<1x128xf32> -> vector<1x128xf32>
    %c0_19 = arith.constant 0 : index
    %c0_20 = arith.constant 0 : index
    %c0_21 = arith.constant 0 : index
    %29 = vector.load %arg8[%c0_19, %c0_20, %c0_21] : memref<1x1x128xf32, #tpu.memory_space<vmem>>, vector<1x1x128xf32>
    %30 = vector.shape_cast %29 : vector<1x1x128xf32> to vector<1x128xf32>
    %31 = vector.shape_cast %28 : vector<1x128xf32> to vector<1x1x128xf32>
    tpu.vector_store %arg8[%c0_19, %c0_20, %c0_21], %31 {strides = array<i32>} : memref<1x1x128xf32, #tpu.memory_space<vmem>>, vector<1x1x128xf32>,
    return
  }
  func.func @transform_0(%arg0: i32) -> (i32, i32) {
    %c0_i32 = arith.constant 0 : i32
    %c0_i32_0 = arith.constant 0 : i32
    return %arg0, %c0_i32 : i32, i32
  }
  func.func @transform_1(%arg0: i32) -> (i32, i32) {
    %c0_i32 = arith.constant 0 : i32
    %c0_i32_0 = arith.constant 0 : i32
    %c0_i32_1 = arith.constant 0 : i32
    return %c0_i32, %c0_i32_0 : i32, i32
  }
  func.func @transform_2(%arg0: i32) -> (i32, i32) {
    %c0_i32 = arith.constant 0 : i32
    %c0_i32_0 = arith.constant 0 : i32
    %c0_i32_1 = arith.constant 0 : i32
    return %c0_i32, %c0_i32_0 : i32, i32
  }
  func.func @transform_3(%arg0: i32) -> (i32, i32) {
    %c0_i32 = arith.constant 0 : i32
    %c0_i32_0 = arith.constant 0 : i32
    %c0_i32_1 = arith.constant 0 : i32
    return %c0_i32, %c0_i32_0 : i32, i32
  }
  func.func @transform_4(%arg0: i32) -> (i32, i32) {
    %c0_i32 = arith.constant 0 : i32
    %c0_i32_0 = arith.constant 0 : i32
    %c0_i32_1 = arith.constant 0 : i32
    return %c0_i32, %c0_i32_0 : i32, i32
  }
  func.func @transform_5(%arg0: i32) -> (i32, i32) {
    %c0_i32 = arith.constant 0 : i32
    %c0_i32_0 = arith.constant 0 : i32
    %c0_i32_1 = arith.constant 0 : i32
    return %c0_i32, %c0_i32_0 : i32, i32
  }
  func.func @transform_6(%arg0: i32) -> (i32, i32) {
    %c0_i32 = arith.constant 0 : i32
    %c0_i32_0 = arith.constant 0 : i32
    %c0_i32_1 = arith.constant 0 : i32
    return %c0_i32, %c0_i32_0 : i32, i32
  }
  func.func @transform_7(%arg0: i32) -> (i32, i32, i32) {
    %c0_i32 = arith.constant 0 : i32
    %c0_i32_0 = arith.constant 0 : i32
    %c0_i32_1 = arith.constant 0 : i32
    return %arg0, %c0_i32, %c0_i32_0 : i32, i32, i32
  }
}

</mosaic_0001>

<bundles_post_ra>
// kernel: tpu_custom_call.1
= control target key start
LH: loop header
LB: loop body
LE: loop exit
PB: predicated region body
PF: predicated region fallthrough
CT: control target
= control target key end

     0   :  { %s857_s0 = inlined_call_operand.vmem [shape: f32[128,32], index: 0, kind: input, shape index: {}]   ;;  %s858_s1 = inlined_call_operand.vmem [shape: bf16[32,128], index: 1, kind: input, shape index: {}]   ;;  %s859_s2 = inlined_call_operand.vmem [shape: f32[1,128], index: 2, kind: input, shape index: {}]   ;;  %s860_s3 = inlined_call_operand.vmem [shape: bf16[128,64], index: 3, kind: input, shape index: {}]   ;;  %s861_s4 = inlined_call_operand.vmem [shape: f32[1,64], index: 4, kind: input, shape index: {}]   ;;  %s862_s5 = inlined_call_operand.vmem [shape: bf16[1,64], index: 5, kind: input, shape index: {}]   ;;  %s863_s6 = inlined_call_operand.<no memory space> [shape: f32[1,1], index: 6, kind: input, shape index: {}]   ;;  %s864_s7 = inlined_call_operand.hbm [shape: f32[1,1,128], index: 7, kind: output, shape index: {}]  }
   0x1   :  { %v12_v0 = vstv %s863_s6 }
   0x2   :  { %13 = vst [vmem:[#allocation2] sm:$0x1] %v12_v0 }
   0x3   :  { %v647_v1 = vld [vmem:[%s858_s1] sm:$0xff]   ;;  %v648_v2 = vld [vmem:[%s858_s1 + $0x8] sm:$0xff]   ;;  %vm77_vm0 = vcmask 261120   ;;  %v32_v6 = vld [vmem:[%s857_s0 + $0x10] sm:$0xff] }
   0x4   :  { %570 = vmatprep.subr.bf16.mxu1 %v647_v1  ;;  %v30_v3 = vld [vmem:[%s857_s0] sm:$0xff]  ;;  %v31_v4 = vld [vmem:[%s857_s0 + $0x8] sm:$0xff]  ;;  %v33_v7 = vld [vmem:[%s857_s0 + $0x18] sm:$0xff] }
   0x5   :  { %571 = vmatpush3.bf16.msra.mxu1 %v647_v1  ;;  %v46_v5 = vpack.c.bf16 %v31_v4, %v30_v3  ;;  %v34_v8 = vld [vmem:[%s857_s0 + $0x20] sm:$0xff]  ;;  %v35_v9 = vld [vmem:[%s857_s0 + $0x28] sm:$0xff]  ;;  %v47_v10 = vpack.c.bf16 %v33_v7, %v32_v6  ;;  %v36_v13 = vld [vmem:[%s857_s0 + $0x30] sm:$0xff] }
   0x6   :  { %572 = vmatprep.subr.bf16.mxu1 %v648_v2  ;;  %v48_v11 = vpack.c.bf16 %v35_v9, %v34_v8  ;;  %v649_v12 = vld [vmem:[%s860_s3] sm:$0xff]   ;;  %v37_v14 = vld [vmem:[%s857_s0 + $0x38] sm:$0xff]  ;;  %v650_v15 = vld [vmem:[%s860_s3 + $0x8] sm:$0xff]  }
   0x7   :  { %574 = vmatprep.mubr.msk.bf16.mxu1 %vm77_vm0, %v46_v5  ;;  %v38_v16 = vld [vmem:[%s857_s0 + $0x40] sm:$0xff]  ;;  %v39_v17 = vld [vmem:[%s857_s0 + $0x48] sm:$0xff]  ;;  %v651_v18 = vld [vmem:[%s860_s3 + $0x10] sm:$0xff]   ;;  %v49_v19 = vpack.c.bf16 %v37_v14, %v36_v13 }
   0x9   :  { %573 = vmatpush3.bf16.msra.mxu1 %v648_v2 }
   0xa   :  { %590 = vmatprep.subr.bf16.mxu1 %v649_v12 }
   0xc   :  { %575 = vmatmul.mubr.msk.bf16.vlgmr.msra.gmra.mrb[0].mxu1 %vm77_vm0, %v47_v10 }
   0xd   :  { %578 = vmatprep.mubr.msk.bf16.mxu1 %vm77_vm0, %v48_v11  ;;  %591 = vmatpush3.bf16.msra.mxu1 %v649_v12 }
   0xe   :  { %592 = vmatprep.subr.bf16.mxu1 %v650_v15 }
   0xf   :  { %14 = vsyncpa [#allocation4], 0  ;;  %v50_v20 = vpack.c.bf16 %v39_v17, %v38_v16  ;;  %v652_v21 = vld [vmem:[%s860_s3 + $0x18] sm:$0xff]   ;;  %v40_v22 = vld [vmem:[%s857_s0 + $0x50] sm:$0xff]  ;;  %vm686_vm1 = vmmov 0   ;;  %vm426_vm2 = vcmask 523264  }
  0x10   :  { %v41_v23 = vld [vmem:[%s857_s0 + $0x58] sm:$0xff]  ;;  %v42_v24 = vld [vmem:[%s857_s0 + $0x60] sm:$0xff]  ;;  %v43_v25 = vld [vmem:[%s857_s0 + $0x68] sm:$0xff]  ;;  %s688_s30 = smov [#allocation3]  }
  0x11   :  { %593 = vmatpush3.bf16.msra.mxu1 %v650_v15  ;;  %v653_v26 = vld [vmem:[%s860_s3 + $0x20] sm:$0xff]   ;;  %v51_v27 = vpack.c.bf16 %v41_v23, %v40_v22  ;;  %v52_v28 = vpack.c.bf16 %v43_v25, %v42_v24  ;;  %v654_v29 = vld [vmem:[%s860_s3 + $0x28] sm:$0xff]   ;;  %v44_v30 = vld [vmem:[%s857_s0 + $0x70] sm:$0xff] }
  0x12   :  { %594 = vmatprep.subr.bf16.mxu1 %v651_v18  ;;  %v45_v31 = vld [vmem:[%s857_s0 + $0x78] sm:$0xff]  ;;  %v655_v33 = vld [vmem:[%s860_s3 + $0x30] sm:$0xff]   ;;  %v514_v35 = vld [vmem:[%s859_s2] ss:$0 sm:$0xff] }
  0x13   :  { %v53_v32 = vpack.c.bf16 %v45_v31, %v44_v30  ;;  %v656_v34 = vld [vmem:[%s860_s3 + $0x38] sm:$0xff]   ;;  %v687_v30 = vmov 0   ;;  %v525_v31 = vld [vmem:[%s861_s4] ss:$0 sm:$0xff] }
  0x14   :  { %579 = vmatmul.mubr.msk.bf16.gmra.mrb[4].mxu1 %vm77_vm0, %v49_v19  ;;  %646 = vset.pattern.permute.xlu0 %v687_v30 }
  0x15   :  { %582 = vmatprep.mubr.msk.bf16.mxu1 %vm77_vm0, %v50_v20  ;;  %595 = vmatpush3.bf16.msra.mxu1 %v651_v18 }
  0x16   :  { %596 = vmatprep.subr.bf16.mxu1 %v652_v21 }
  0x19   :  { %597 = vmatpush3.bf16.msra.mxu1 %v652_v21 }
  0x1a   :  { %598 = vmatprep.subr.bf16.mxu1 %v653_v26 }
  0x1c   :  { %583 = vmatmul.mubr.msk.bf16.gmra.mrb[8].mxu1 %vm77_vm0, %v51_v27 }
  0x1d   :  { %586 = vmatprep.mubr.msk.bf16.mxu1 %vm77_vm0, %v52_v28  ;;  %599 = vmatpush3.bf16.msra.mxu1 %v653_v26  ;;  %v685_v28 = vmov 0.0  }
  0x1e   :  { %600 = vmatprep.subr.bf16.mxu1 %v654_v29  ;;  %622 = vmatprep.subr.bf16.mxu0 %v685_v28 }
  0x1f   :  { %638 = vmatprep.mubr.msk.bf16.mxu0 %vm686_vm1, %v685_v28 }
  0x21   :  { %601 = vmatpush3.bf16.msra.mxu1 %v654_v29  ;;  %v416_v29 = vld [vmem:[#allocation2] sm:$0x1] }
  0x22   :  { %602 = vmatprep.subr.bf16.mxu1 %v655_v33  ;;  %419 = vperm.xlu0 %646, %v416_v29  }
  0x24   :  { %587 = vmatmul.mubr.msk.bf16.gmra.mrb[12].mxu1 %vm77_vm0, %v53_v32 }
  0x25   :  { %603 = vmatpush3.bf16.msra.mxu1 %v655_v33 }
  0x26   :  { %604 = vmatprep.subr.bf16.mxu1 %v656_v34 }
  0x29   :  { %605 = vmatpush3.bf16.msra.mxu1 %v656_v34 }
  0xdf   :  { %v576_v36 = vpop.f32.mrb[0].mxu1 }
  0xe0   :  { %v145_v37 = vadd.f32 %v576_v36, %v514_v35  ;;  %v136_v38 = vpop.f32.mrb[1].mxu1 }
  0xe1   :  { %v137_v39 = vadd.f32 %v514_v35, %v136_v38  ;;  %v577_v40 = vpop.f32.mrb[2].mxu1 }
  0xe2   :  { %v148_v41 = vadd.f32 %v577_v40, %v514_v35  ;;  %v139_v42 = vpop.f32.mrb[3].mxu1  ;;  %v201_v44 = vmax.f32 %v145_v37, 0.0 }
  0xe3   :  { %v140_v43 = vadd.f32 %v514_v35, %v139_v42  ;;  %v199_v46 = vmax.f32 %v137_v39, 0.0 }
  0xe4   :  { %v202_v45 = vmax.f32 %v148_v41, 0.0 }
  0xe5   :  { %v200_v47 = vmax.f32 %v140_v43, 0.0 }
  0xe6   :  { %v216_v48 = vpack.c.bf16 %v202_v45, %v201_v44 }
  0xe7   :  { %v215_v49 = vpack.c.bf16 %v200_v47, %v199_v46  ;;  %v580_v50 = vpop.f32.mrb[4].mxu1 }
  0xe8   :  { %v161_v51 = vadd.f32 %v580_v50, %v514_v35  ;;  %v152_v52 = vpop.f32.mrb[5].mxu1 }
  0xe9   :  { %v153_v53 = vadd.f32 %v514_v35, %v152_v52  ;;  %606 = vmatprep.mubr.bf16.mxu1 %v215_v49  ;;  %v581_v54 = vpop.f32.mrb[6].mxu1 }
  0xea   :  { %v205_v55 = vmax.f32 %v161_v51, 0.0  ;;  %v164_v56 = vadd.f32 %v581_v54, %v514_v35  ;;  %607 = vmatmul.mubr.bf16.vlgmr.msra.gmra.mrb[16].mxu1 %v216_v48  ;;  %v155_v57 = vpop.f32.mrb[7].mxu1 }
  0xeb   :  { %v203_v58 = vmax.f32 %v153_v53, 0.0  ;;  %v156_v59 = vadd.f32 %v514_v35, %v155_v57 }
  0xec   :  { %v206_v60 = vmax.f32 %v164_v56, 0.0 }
  0xed   :  { %v204_v61 = vmax.f32 %v156_v59, 0.0 }
  0xee   :  { %v218_v62 = vpack.c.bf16 %v206_v60, %v205_v55 }
  0xef   :  { %v217_v63 = vpack.c.bf16 %v204_v61, %v203_v58  ;;  %v584_v0 = vpop.f32.mrb[8].mxu1 }
  0xf0   :  { %v177_v1 = vadd.f32 %v584_v0, %v514_v35  ;;  %v168_v2 = vpop.f32.mrb[9].mxu1 }
  0xf1   :  { %610 = vmatprep.mubr.bf16.mxu1 %v217_v63  ;;  %v169_v3 = vadd.f32 %v514_v35, %v168_v2  ;;  %v585_v4 = vpop.f32.mrb[10].mxu1 }
  0xf2   :  { %611 = vmatmul.mubr.bf16.gmra.mrb[20].mxu1 %v218_v62  ;;  %v209_v5 = vmax.f32 %v177_v1, 0.0  ;;  %v180_v6 = vadd.f32 %v585_v4, %v514_v35  ;;  %v171_v7 = vpop.f32.mrb[11].mxu1 }
  0xf3   :  { %v207_v8 = vmax.f32 %v169_v3, 0.0  ;;  %v172_v9 = vadd.f32 %v514_v35, %v171_v7 }
  0xf4   :  { %v210_v10 = vmax.f32 %v180_v6, 0.0 }
  0xf5   :  { %v208_v11 = vmax.f32 %v172_v9, 0.0 }
  0xf6   :  { %v220_v12 = vpack.c.bf16 %v210_v10, %v209_v5 }
  0xf7   :  { %v219_v13 = vpack.c.bf16 %v208_v11, %v207_v8  ;;  %v588_v14 = vpop.f32.mrb[12].mxu1 }
  0xf8   :  { %v193_v15 = vadd.f32 %v588_v14, %v514_v35  ;;  %v184_v16 = vpop.f32.mrb[13].mxu1 }
  0xf9   :  { %614 = vmatprep.mubr.bf16.mxu1 %v219_v13  ;;  %v185_v17 = vadd.f32 %v514_v35, %v184_v16  ;;  %v589_v18 = vpop.f32.mrb[14].mxu1 }
  0xfa   :  { %615 = vmatmul.mubr.bf16.gmra.mrb[24].mxu1 %v220_v12  ;;  %v213_v19 = vmax.f32 %v193_v15, 0.0  ;;  %v196_v20 = vadd.f32 %v589_v18, %v514_v35  ;;  %v187_v21 = vpop.f32.mrb[15].mxu1 }
  0xfb   :  { %v211_v22 = vmax.f32 %v185_v17, 0.0  ;;  %v188_v23 = vadd.f32 %v514_v35, %v187_v21 }
  0xfc   :  { %v214_v24 = vmax.f32 %v196_v20, 0.0 }
  0xfd   :  { %v212_v25 = vmax.f32 %v188_v23, 0.0 }
  0xfe   :  { %v222_v26 = vpack.c.bf16 %v214_v24, %v213_v19 }
  0xff   :  { %v221_v27 = vpack.c.bf16 %v212_v25, %v211_v22 }
 0x101   :  { %618 = vmatprep.mubr.bf16.mxu1 %v221_v27 }
 0x102   :  { %619 = vmatmul.mubr.bf16.gmra.mrb[28].mxu1 %v222_v26 }
 0x1bd   :  { %v608_v32 = vpop.f32.mrb[16].mxu1 }
 0x1be   :  { %v337_v33 = vadd.f32 %v608_v32, %v525_v31  ;;  %v328_v34 = vpop.f32.mrb[17].mxu1 }
 0x1bf   :  { %v329_v35 = vadd.f32 %v525_v31, %v328_v34  ;;  %v609_v36 = vpop.f32.mrb[18].mxu1  ;;  %v422_v34 = vlaneseq }
 0x1c0   :  { %v340_v37 = vadd.f32 %v609_v36, %v525_v31  ;;  %v331_v38 = vpop.f32.mrb[19].mxu1  ;;  %v393_v40 = vmax.f32 %v337_v33, 0.0  ;;  %v407_v33 = vld [vmem:[%s862_s5] sm:$0x1]  ;;  %s506_s5 = sshll.u32 %s688_s30, 4  ;;  %s507_s5 = int_to_ptr.vmem [resolvable:$true] %s506_s5 }
 0x1c1   :  { %v332_v39 = vadd.f32 %v525_v31, %v331_v38  ;;  %v391_v42 = vmax.f32 %v329_v35, 0.0  ;;  %v423_v35 = vshrl.u32 %v422_v34, 7  ;;  %s661_s8 = scalar_lea.vmem %s507_s5, 16  ;;  %s665_s9 = scalar_lea.vmem %s507_s5, 32 }
 0x1c2   :  { %v394_v41 = vmax.f32 %v340_v37, 0.0  ;;  %v420_v37 = vpop.permute.xlu0 %419  ;;  %p662_p0 = scmp.ne.s32.totalorder %s507_s5, %s661_s8  ;;  %p666_p1 = scmp.lt.s32.totalorder %s507_s5, %s507_s5 }
 0x1c3   :  { %v392_v43 = vmax.f32 %v332_v39, 0.0  ;;  %v424_v36 = vsub.s32 0, %v423_v35  ;;  %p667_p2 = scmp.lt.s32.totalorder %s665_s9, %s661_s8 }
 0x1c4   :  { %v409_v44 = vpack.c.bf16 %v394_v41, %v393_v40 }
 0x1c5   :  { %v612_v45 = vpop.f32.mrb[20].mxu1  ;;  %v408_v46 = vpack.c.bf16 %v392_v43, %v391_v42  ;;  %v425_v38 = vrot.slane %v420_v37, %v424_v36  ;;  %p668_p3 = por %p667_p2, %p666_p1 }
 0x1c6   :  { %v353_v47 = vadd.f32 %v612_v45, %v525_v31  ;;  %v344_v48 = vpop.f32.mrb[21].mxu1  ;;  %v434_v0 = vsel %vm426_vm2, %v409_v44, 0 }
 0x1c7   :  { %v345_v49 = vadd.f32 %v525_v31, %v344_v48  ;;  %v613_v50 = vpop.f32.mrb[22].mxu1  ;;  %v431_v51 = vsel %vm426_vm2, %v408_v46, 0  ;;  %p669_p4 = pnand %p668_p3, %p662_p0 }
 0x1c8   :  { %v397_v52 = vmax.f32 %v353_v47, 0.0  ;;  %v356_v53 = vadd.f32 %v613_v50, %v525_v31  ;;  %623 = vmatpush3.bf16.xpose.msra.mxu0 %v431_v51  ;;  %v347_v54 = vpop.f32.mrb[23].mxu1 }
 0x1c9   :  { %v395_v55 = vmax.f32 %v345_v49, 0.0  ;;  %v348_v56 = vadd.f32 %v525_v31, %v347_v54  ;;  %624 = vmatprep.subr.bf16.mxu0 %v685_v28 }
 0x1ca   :  { %v398_v57 = vmax.f32 %v356_v53, 0.0 }
 0x1cb   :  { %v396_v58 = vmax.f32 %v348_v56, 0.0 }
 0x1cc   :  { %v411_v59 = vpack.c.bf16 %v398_v57, %v397_v52 }
 0x1cd   :  { %v410_v60 = vpack.c.bf16 %v396_v58, %v395_v55  ;;  %v616_v61 = vpop.f32.mrb[24].mxu1 }
 0x1ce   :  { %v369_v62 = vadd.f32 %v616_v61, %v525_v31  ;;  %v360_v63 = vpop.f32.mrb[25].mxu1  ;;  %v440_v27 = vsel %vm426_vm2, %v411_v59, 0 }
 0x1cf   :  { %v361_v1 = vadd.f32 %v525_v31, %v360_v63  ;;  %v617_v2 = vpop.f32.mrb[26].mxu1  ;;  %v437_v15 = vsel %vm426_vm2, %v410_v60, 0 }
 0x1d0   :  { %625 = vmatpush3.bf16.xpose.msra.mxu0 %v434_v0  ;;  %v401_v3 = vmax.f32 %v369_v62, 0.0  ;;  %v372_v4 = vadd.f32 %v617_v2, %v525_v31  ;;  %v363_v5 = vpop.f32.mrb[27].mxu1 }
 0x1d1   :  { %v399_v6 = vmax.f32 %v361_v1, 0.0  ;;  %626 = vmatprep.subr.bf16.mxu0 %v685_v28  ;;  %v364_v7 = vadd.f32 %v525_v31, %v363_v5 }
 0x1d2   :  { %v402_v8 = vmax.f32 %v372_v4, 0.0 }
 0x1d3   :  { %v400_v9 = vmax.f32 %v364_v7, 0.0 }
 0x1d4   :  { %v413_v10 = vpack.c.bf16 %v402_v8, %v401_v3 }
 0x1d5   :  { %v412_v11 = vpack.c.bf16 %v400_v9, %v399_v6  ;;  %v620_v12 = vpop.f32.mrb[28].mxu1 }
 0x1d6   :  { %v385_v13 = vadd.f32 %v620_v12, %v525_v31  ;;  %v376_v14 = vpop.f32.mrb[29].mxu1  ;;  %v446_v30 = vsel %vm426_vm2, %v413_v10, 0 }
 0x1d7   :  { %v377_v16 = vadd.f32 %v525_v31, %v376_v14  ;;  %v621_v17 = vpop.f32.mrb[30].mxu1  ;;  %v443_v29 = vsel %vm426_vm2, %v412_v11, 0 }
 0x1d8   :  { %627 = vmatpush3.bf16.xpose.msra.mxu0 %v437_v15  ;;  %v405_v18 = vmax.f32 %v385_v13, 0.0  ;;  %v388_v19 = vadd.f32 %v621_v17, %v525_v31  ;;  %v379_v20 = vpop.f32.mrb[31].mxu1 }
 0x1d9   :  { %628 = vmatprep.subr.bf16.mxu0 %v685_v28  ;;  %v403_v21 = vmax.f32 %v377_v16, 0.0  ;;  %v380_v22 = vadd.f32 %v525_v31, %v379_v20 }
 0x1da   :  { %v406_v23 = vmax.f32 %v388_v19, 0.0 }
 0x1db   :  { %v404_v24 = vmax.f32 %v380_v22, 0.0 }
 0x1dc   :  { %v415_v25 = vpack.c.bf16 %v406_v23, %v405_v18 }
 0x1dd   :  { %v414_v26 = vpack.c.bf16 %v404_v24, %v403_v21 }
 0x1de   :  { %v452_v32 = vsel %vm426_vm2, %v415_v25, 0 }
 0x1df   :  { %v449_v31 = vsel %vm426_vm2, %v414_v26, 0 }
 0x1e0   :  { %629 = vmatpush3.bf16.xpose.msra.mxu0 %v440_v27 }
 0x1e1   :  { %630 = vmatprep.subr.bf16.mxu0 %v685_v28 }
 0x1e8   :  { %631 = vmatpush3.bf16.xpose.msra.mxu0 %v443_v29 }
 0x1e9   :  { %632 = vmatprep.subr.bf16.mxu0 %v685_v28 }
 0x1f0   :  { %633 = vmatpush3.bf16.xpose.msra.mxu0 %v446_v30 }
 0x1f1   :  { %634 = vmatprep.subr.bf16.mxu0 %v685_v28 }
 0x1f8   :  { %635 = vmatpush3.bf16.xpose.msra.mxu0 %v449_v31 }
 0x1f9   :  { %636 = vmatprep.subr.bf16.mxu0 %v685_v28 }
 0x200   :  { %637 = vmatpush3.bf16.xpose.msra.mxu0 %v452_v32 }
 0x207   :  { %639 = vmatmul.mubr.msk.bf16.vlgmr.msra.gmra.mrb[0].mxu0 %vm426_vm2, %v407_v33 }
 0x2da   :  { %v488_v39 = vpop.f32.mrb[0].mxu0 }
 0x2db   :  { %v489_v40 = vadd.f32 %v488_v39, %v425_v38  ;;  %v640_v41 = vpop.f32.mrb[1].mxu0 }
 0x2dc   :  { %v491_v42 = vpop.f32.mrb[2].mxu0 }
 0x2dd   :  { %v494_v43 = vsub.f32 0.0, %v489_v40  ;;  %v641_v28 = vpop.f32.mrb[3].mxu0 }
 0x2df   :  { %v495_v44 = vmul.f32 1.442695, %v494_v43 }
 0x2e1   :  { %657 = vpow2.f32 %v495_v44 }
 0x2eb   :  { %v658_v45 = vpop.eup %657 }
 0x2ec   :  { %v497_v46 = vadd.f32 1.0, %v658_v45 }
 0x2ee   :  { %659 = vrcp.f32 %v497_v46 }
 0x2f8   :  { %v660_v47 = vpop.eup %659 }
 0x2f9   :  { %499 = vst [vmem:[#allocation3] sm:$0x1] %v660_v47 }
 0x2fa   :  { %672 = shalt.err (!%p669_p4)
}
 0x2fb   :  { %s673_s11 = scalar_lea.hbm %s864_s7, 16 }
 0x2fc   :  { %p674_p5 = scmp.ne.s32.totalorder %s864_s7, %s673_s11  ;;  %p677_p6 = scmp.lt.u32.totalorder %s673_s11, %s864_s7 }
 0x2fe   :  { %p679_p7 = pnand %p677_p6, %p674_p5 }
 0x300   :  { %682 = shalt.err (!%p679_p7)
}
 0x301   :  { %509 = dma.vmem_to_hbm [thread:$0]  %s507_s5, 16, %s864_s7, [#allocation4]  }
 0x302   :  { %683 = dma.done.wait [#allocation4], 16  }
 0x303   :  { %684 = vsyncadd [#allocation4], 4294967280 }
 0x304   :  { %513 = vsyncpa [#allocation4], 1 }

</bundles_post_ra>
